<compile_context>
chip_gen: v7x
topology: tpu7x:2x2x1
jax: 0.10.0
libtpu: 0.0.40
codegen_flags: <defaults>
</compile_context>

<pallas_src>
import jax
import jax.numpy as jnp
from jax import lax
from jax.experimental import pallas as pl
from jax.experimental.pallas import tpu as pltpu


EPS = 1e-3  # BatchNorm2d eps=0.001


def _make_fused_kernel(n, cin, cout, kh, kw, wp, wo, ho, l_pad, eps, compute_dtype):
    """Fused conv + batch-stats + normalize + ReLU kernel (closure over static shapes)."""
    count = float(n * ho * wo)  # number of VALID output positions over the whole batch

    def kernel(x_ref, w_ref, gb_ref, out_ref, y_scr, sum_scr, sumsq_scr):
        p = pl.program_id(0)   # phase: 0 = conv + stats, 1 = normalize + ReLU
        i = pl.program_id(1)   # image index

        @pl.when((p == 0) & (i == 0))
        def _init_stats():
            sum_scr[...] = jnp.zeros_like(sum_scr)
            sumsq_scr[...] = jnp.zeros_like(sumsq_scr)

        @pl.when(p == 0)
        def _conv_and_stats():
            xw = x_ref[...].astype(compute_dtype)                       # [Cin, Spp]
            # Build the shifted im2col stack ONCE per image; one K=KH*KW*Cin matmul.
            taps = [xw[:, ky * wp + kx: ky * wp + kx + l_pad]
                    for ky in range(kh) for kx in range(kw)]             # each [Cin, L]
            stack = jnp.concatenate(taps, axis=0)                        # [KH*KW*Cin, L]
            y = jnp.dot(w_ref[...], stack,
                        preferred_element_type=jnp.float32)              # [Cout, L] f32
            y_scr[i] = y

            # Validity mask built in-kernel: flat column index < Wo (drop wrap garbage).
            col = lax.broadcasted_iota(jnp.int32, (1, l_pad), 1) % wp
            ym = jnp.where(col < wo, y, 0.0)
            sum_scr[...] += jnp.sum(ym, axis=1, keepdims=True)           # [Cout, 1]
            sumsq_scr[...] += jnp.sum(ym * ym, axis=1, keepdims=True)    # [Cout, 1]

        @pl.when(p == 1)
        def _normalize():
            mean = sum_scr[...] / count                                   # [Cout, 1]
            var = jnp.maximum(sumsq_scr[...] / count - mean * mean, 0.0)  # biased var
            inv_std = lax.rsqrt(var + eps)
            scale = gb_ref[:, 0:1] * inv_std                              # gamma * inv_std
            shift = gb_ref[:, 1:2] - mean * scale                         # beta - mean*scale
            y = y_scr[i]                                                  # cached conv
            out_ref[...] = jnp.maximum(y * scale + shift, 0.0).astype(out_ref.dtype)

    return kernel


def conv_block_forward(x, weight, gamma, beta, *, padding, eps=EPS,
                       compute_dtype=jnp.float32, out_dtype=None):
    """x: [N, Cin, H, W] (NCHW), weight: [Cout, Cin, KH, KW] (PyTorch layout), stride 1."""
    n, cin, h, w = x.shape
    cout, cin_w, kh, kw = weight.shape
    assert cin == cin_w
    hp, wp = h + 2 * padding, w + 2 * padding
    ho, wo = hp - kh + 1, wp - kw + 1        # stride 1
    assert ho >= 1 and wo >= 1
    l_pad = ho * wp                          # flat positions computed per image
    spp = (hp + 1) * wp                      # one extra zero row >= Hp*Wp + (KW-1) tail
    out_dtype = x.dtype if out_dtype is None else out_dtype

    # ONE host-side pad: H by (p, p+1) (the extra bottom row covers the flat tap-window
    # tail), W by (p, p).  Reshape to the flat spatial layout is free.
    xf = jnp.pad(x, ((0, 0), (0, 0), (padding, padding + 1), (padding, padding)))
    xf = xf.reshape(n, cin, spp)

    # [Cout, Cin, KH, KW] -> [Cout, KH*KW*Cin]; row order matches the im2col stack
    # (tap-major: row = (ky*KW + kx)*Cin + c).
    w2d = jnp.transpose(weight, (0, 2, 3, 1)).reshape(cout, kh * kw * cin)
    w2d = w2d.astype(compute_dtype)

    gb = jnp.stack([gamma, beta], axis=1).astype(jnp.float32)            # [Cout, 2]

    kernel = _make_fused_kernel(n, cin, cout, kh, kw, wp, wo, ho, l_pad, eps,
                                compute_dtype)

    conv_flops = 2 * n * cout * (kh * kw * cin) * l_pad
    bytes_accessed = (xf.size * xf.dtype.itemsize
                      + w2d.size * jnp.dtype(compute_dtype).itemsize
                      + gb.size * 4
                      + n * cout * l_pad * jnp.dtype(out_dtype).itemsize)

    out_flat = pl.pallas_call(
        kernel,
        out_shape=jax.ShapeDtypeStruct((n, cout, l_pad), out_dtype),
        grid=(2, n),                         # (phase, image); runs in order, phase outer
        in_specs=[
            pl.BlockSpec((None, cin, spp), lambda p, i: (i, 0, 0)),       # per-image x
            pl.BlockSpec((cout, kh * kw * cin), lambda p, i: (0, 0)),     # weights (resident)
            pl.BlockSpec((cout, 2), lambda p, i: (0, 0)),                 # gamma/beta
        ],
        # i*p keeps every phase-0 step on block 0 so no uninitialized block is ever
        # written back; phase-1 step i writes block i exactly once.
        out_specs=pl.BlockSpec((None, cout, l_pad), lambda p, i: (i * p, 0, 0)),
        scratch_shapes=[
            pltpu.VMEM((n, cout, l_pad), jnp.float32),    # cached conv results (all images)
            pltpu.VMEM((cout, 1), jnp.float32),           # per-channel sum
            pltpu.VMEM((cout, 1), jnp.float32),           # per-channel sum of squares
        ],
        compiler_params=pltpu.CompilerParams(
            dimension_semantics=("arbitrary", "arbitrary"),  # sequential: stats dependency
            vmem_limit_bytes=32 * 1024 * 1024,
        ),
        cost_estimate=pl.CostEstimate(
            flops=conv_flops + 4 * n * cout * l_pad,
            transcendentals=cout,
            bytes_accessed=int(bytes_accessed)),
    )(xf, w2d, gb)

    # [N, Cout, Ho*Wp] -> [N, Cout, Ho, Wp] (free) -> drop the KW-1 wrap-garbage columns.
    out = out_flat.reshape(n, cout, ho, wp)[:, :, :, :wo]
    return out


def conv_block_reference(x, weight, gamma, beta, *, padding, eps=EPS,
                         conv_dtype=jnp.float32):
    """Pure-JAX reference (conv + training-mode BN + ReLU)."""
    y = lax.conv_general_dilated(
        x.astype(conv_dtype), weight.astype(conv_dtype),
        window_strides=(1, 1),
        padding=((padding, padding), (padding, padding)),
        dimension_numbers=("NCHW", "OIHW", "NCHW"),
        preferred_element_type=jnp.float32,
    )
    mean = jnp.mean(y, axis=(0, 2, 3), keepdims=True)
    var = jnp.mean((y - mean) ** 2, axis=(0, 2, 3), keepdims=True)   # biased
    y_hat = (y - mean) * lax.rsqrt(var + eps)
    y_bn = y_hat * gamma.reshape(1, -1, 1, 1) + beta.reshape(1, -1, 1, 1)
    return jnp.maximum(y_bn, 0.0)


if __name__ == "__main__":
    key = jax.random.PRNGKey(0)
    k_x, k_w, k_g, k_b = jax.random.split(key, 4)

    # ConvBlock(in_channels=4, out_channels=8, kernel_size=3, padding=1)
    N, C_IN, H, W = 2, 4, 16, 16
    C_OUT, KH, KW, PAD = 8, 3, 3, 1

    x = jax.random.normal(k_x, (N, C_IN, H, W), dtype=jnp.float32)
    weight = 0.1 * jax.random.normal(k_w, (C_OUT, C_IN, KH, KW), dtype=jnp.float32)
    gamma = 1.0 + 0.1 * jax.random.normal(k_g, (C_OUT,), dtype=jnp.float32)
    beta = 0.1 * jax.random.normal(k_b, (C_OUT,), dtype=jnp.float32)

    fwd = jax.jit(conv_block_forward, static_argnames=("padding",))
    out = jax.block_until_ready(fwd(x, weight, gamma, beta, padding=PAD))
    assert out.shape == (N, C_OUT, H, W)
    assert out.dtype == jnp.float32

    # Default path runs the conv with f32 inputs -> tight match vs. the f32 module semantics.
    ref_f32 = conv_block_reference(x, weight, gamma, beta, padding=PAD,
                                   conv_dtype=jnp.float32)
    assert jnp.allclose(out, ref_f32, atol=2e-3, rtol=2e-3), "mismatch vs f32 reference"

    print("KERNEL_OK")
</pallas_src>

<mosaic_0001>
module attributes {stable_mosaic.version = 11 : i64} {
  func.func @kernel(%arg0: i32, %arg1: i32, %arg2: memref<1x4x342xf32, #tpu.memory_space<vmem>>, %arg3: memref<8x36xf32, #tpu.memory_space<vmem>>, %arg4: memref<8x2xf32, #tpu.memory_space<vmem>>, %arg5: memref<1x8x288xf32, #tpu.memory_space<vmem>>, %arg6: memref<2x8x288xf32, #tpu.memory_space<vmem>>, %arg7: memref<8x1xf32, #tpu.memory_space<vmem>>, %arg8: memref<8x1xf32, #tpu.memory_space<vmem>>) attributes {dimension_semantics = [#tpu.dimension_semantics<arbitrary>, #tpu.dimension_semantics<arbitrary>], iteration_bounds = array<i64: 2, 2>, scalar_prefetch = 0 : i64, scratch_operands = 3 : i64, tpu.core_type = #tpu.core_type<tc>, window_params = [{transform_indices = @transform_0, window_bounds = array<i64: 1, 4, 342>}, {pipeline_mode = #tpu.pipeline_mode<synchronous>, transform_indices = @transform_1, window_bounds = array<i64: 8, 36>}, {pipeline_mode = #tpu.pipeline_mode<synchronous>, transform_indices = @transform_2, window_bounds = array<i64: 8, 2>}, {transform_indices = @transform_3, window_bounds = array<i64: 1, 8, 288>}]} {
    %c0_i32 = arith.constant 0 : i32
    %0 = arith.cmpi eq, %arg0, %c0_i32 : i32
    %c0_i32_0 = arith.constant 0 : i32
    %1 = arith.cmpi eq, %arg1, %c0_i32_0 : i32
    %2 = arith.andi %0, %1 : i1
    %3 = arith.extui %2 : i1 to i32
    %c0_i32_1 = arith.constant 0 : i32
    %4 = arith.cmpi ne, %3, %c0_i32_1 : i32
    scf.if %4 {
      %cst = arith.constant 0.000000e+00 : f32
      %11 = vector.broadcast %cst : f32 to vector<8x1xf32>
      %c0 = arith.constant 0 : index
      %c0_5 = arith.constant 0 : index
      %12 = vector.load %arg7[%c0, %c0_5] : memref<8x1xf32, #tpu.memory_space<vmem>>, vector<8x1xf32>
      tpu.vector_store %arg7[%c0, %c0_5], %11 {strides = array<i32>} : memref<8x1xf32, #tpu.memory_space<vmem>>, vector<8x1xf32>,
      %cst_6 = arith.constant 0.000000e+00 : f32
      %13 = vector.broadcast %cst_6 : f32 to vector<8x1xf32>
      %c0_7 = arith.constant 0 : index
      %c0_8 = arith.constant 0 : index
      %14 = vector.load %arg8[%c0_7, %c0_8] : memref<8x1xf32, #tpu.memory_space<vmem>>, vector<8x1xf32>
      tpu.vector_store %arg8[%c0_7, %c0_8], %13 {strides = array<i32>} : memref<8x1xf32, #tpu.memory_space<vmem>>, vector<8x1xf32>,
    } else {
    }
    %c0_i32_2 = arith.constant 0 : i32
    %5 = arith.cmpi eq, %arg0, %c0_i32_2 : i32
    %6 = arith.extui %5 : i1 to i32
    %c0_i32_3 = arith.constant 0 : i32
    %7 = arith.cmpi ne, %6, %c0_i32_3 : i32
    scf.if %7 {
      %c0 = arith.constant 0 : index
      %c0_5 = arith.constant 0 : index
      %c0_6 = arith.constant 0 : index
      %11 = vector.load %arg2[%c0, %c0_5, %c0_6] : memref<1x4x342xf32, #tpu.memory_space<vmem>>, vector<1x4x342xf32>
      %12 = vector.shape_cast %11 : vector<1x4x342xf32> to vector<4x342xf32>
      %13 = vector.extract_strided_slice %12 {offsets = [0, 0], sizes = [4, 288], strides = [1, 1]} : vector<4x342xf32> to vector<4x288xf32>
      %14 = vector.extract_strided_slice %12 {offsets = [0, 1], sizes = [4, 288], strides = [1, 1]} : vector<4x342xf32> to vector<4x288xf32>
      %15 = vector.extract_strided_slice %12 {offsets = [0, 2], sizes = [4, 288], strides = [1, 1]} : vector<4x342xf32> to vector<4x288xf32>
      %16 = vector.extract_strided_slice %12 {offsets = [0, 18], sizes = [4, 288], strides = [1, 1]} : vector<4x342xf32> to vector<4x288xf32>
      %17 = vector.extract_strided_slice %12 {offsets = [0, 19], sizes = [4, 288], strides = [1, 1]} : vector<4x342xf32> to vector<4x288xf32>
      %18 = vector.extract_strided_slice %12 {offsets = [0, 20], sizes = [4, 288], strides = [1, 1]} : vector<4x342xf32> to vector<4x288xf32>
      %19 = vector.extract_strided_slice %12 {offsets = [0, 36], sizes = [4, 288], strides = [1, 1]} : vector<4x342xf32> to vector<4x288xf32>
      %20 = vector.extract_strided_slice %12 {offsets = [0, 37], sizes = [4, 288], strides = [1, 1]} : vector<4x342xf32> to vector<4x288xf32>
      %21 = vector.extract_strided_slice %12 {offsets = [0, 38], sizes = [4, 288], strides = [1, 1]} : vector<4x342xf32> to vector<4x288xf32>
      %22 = tpu.concatenate %13, %14, %15, %16, %17, %18, %19, %20, %21 in 0 : vector<4x288xf32>, vector<4x288xf32>, vector<4x288xf32>, vector<4x288xf32>, vector<4x288xf32>, vector<4x288xf32>, vector<4x288xf32>, vector<4x288xf32>, vector<4x288xf32> -> vector<36x288xf32>
      %c0_7 = arith.constant 0 : index
      %c0_8 = arith.constant 0 : index
      %23 = vector.load %arg3[%c0_7, %c0_8] : memref<8x36xf32, #tpu.memory_space<vmem>>, vector<8x36xf32>
      %cst = arith.constant dense<0.000000e+00> : vector<8x288xf32>
      %24 = tpu.matmul %23, %22, %cst {dimension_numbers = #tpu.dot_dimension_numbers<[1], [0], [0], [1], [0, 0, 1, 1], [], []>} : vector<8x36xf32>, vector<36x288xf32>, vector<8x288xf32> -> vector<8x288xf32>
      %25 = arith.index_cast %arg1 : i32 to index
      %c0_9 = arith.constant 0 : index
      %c0_10 = arith.constant 0 : index
      %26 = vector.load %arg6[%25, %c0_9, %c0_10] : memref<2x8x288xf32, #tpu.memory_space<vmem>>, vector<1x8x288xf32>
      %27 = vector.shape_cast %26 : vector<1x8x288xf32> to vector<8x288xf32>
      %28 = vector.shape_cast %24 : vector<8x288xf32> to vector<1x8x288xf32>
      tpu.vector_store %arg6[%25, %c0_9, %c0_10], %28 {strides = array<i32>} : memref<2x8x288xf32, #tpu.memory_space<vmem>>, vector<1x8x288xf32>,
      %29 = tpu.iota {dimensions = array<i32: 1>} : vector<1x288xi32>
      %c18_i32 = arith.constant 18 : i32
      %c0_i32_11 = arith.constant 0 : i32
      %30 = arith.cmpi eq, %c18_i32, %c0_i32_11 : i32
      %c1_i32_12 = arith.constant 1 : i32
      %31 = arith.select %30, %c1_i32_12, %c18_i32 : i32
      %32 = vector.broadcast %31 : i32 to vector<1x288xi32>
      %33 = arith.remsi %29, %32 : vector<1x288xi32>
      %c0_i32_13 = arith.constant 0 : i32
      %34 = vector.broadcast %c0_i32_13 : i32 to vector<1x288xi32>
      %35 = arith.cmpi ne, %33, %34 : vector<1x288xi32>
      %c0_i32_14 = arith.constant 0 : i32
      %36 = vector.broadcast %c0_i32_14 : i32 to vector<1x288xi32>
      %37 = arith.cmpi slt, %33, %36 : vector<1x288xi32>
      %c0_i32_15 = arith.constant 0 : i32
      %38 = arith.cmpi slt, %31, %c0_i32_15 : i32
      %39 = vector.broadcast %38 : i1 to vector<1x288xi1>
      %40 = vector.broadcast %39 : vector<1x288xi1> to vector<1x288xi1>
      %41 = arith.xori %37, %40 : vector<1x288xi1>
      %42 = arith.andi %41, %35 : vector<1x288xi1>
      %43 = vector.broadcast %31 : i32 to vector<1x288xi32>
      %44 = arith.addi %33, %43 : vector<1x288xi32>
      %45 = arith.select %42, %44, %33 : vector<1x288xi1>, vector<1x288xi32>
      %c16_i32 = arith.constant 16 : i32
      %46 = vector.broadcast %c16_i32 : i32 to vector<1x288xi32>
      %47 = arith.cmpi slt, %45, %46 : vector<1x288xi32>
      %cst_16 = arith.constant 0.000000e+00 : f32
      %48 = vector.shape_cast %47 : vector<1x288xi1> to vector<1x288xi1>
      %49 = vector.broadcast %48 : vector<1x288xi1> to vector<8x288xi1>
      %50 = vector.broadcast %cst_16 : f32 to vector<8x288xf32>
      %51 = arith.select %49, %24, %50 : vector<8x288xi1>, vector<8x288xf32>
      %c0_17 = arith.constant 0 : index
      %c0_18 = arith.constant 0 : index
      %52 = vector.load %arg7[%c0_17, %c0_18] : memref<8x1xf32, #tpu.memory_space<vmem>>, vector<8x1xf32>
      %cst_19 = arith.constant dense<0.000000e+00> : vector<8xf32>
      %53 = vector.multi_reduction <add>, %51, %cst_19 [1] : vector<8x288xf32> to vector<8xf32>
      %54 = vector.shape_cast %53 : vector<8xf32> to vector<8x1xf32>
      %55 = arith.addf %52, %54 : vector<8x1xf32>
      %c0_20 = arith.constant 0 : index
      %c0_21 = arith.constant 0 : index
      %56 = vector.load %arg7[%c0_20, %c0_21] : memref<8x1xf32, #tpu.memory_space<vmem>>, vector<8x1xf32>
      tpu.vector_store %arg7[%c0_20, %c0_21], %55 {strides = array<i32>} : memref<8x1xf32, #tpu.memory_space<vmem>>, vector<8x1xf32>,
      %c0_22 = arith.constant 0 : index
      %c0_23 = arith.constant 0 : index
      %57 = vector.load %arg8[%c0_22, %c0_23] : memref<8x1xf32, #tpu.memory_space<vmem>>, vector<8x1xf32>
      %58 = arith.mulf %51, %51 : vector<8x288xf32>
      %cst_24 = arith.constant dense<0.000000e+00> : vector<8xf32>
      %59 = vector.multi_reduction <add>, %58, %cst_24 [1] : vector<8x288xf32> to vector<8xf32>
      %60 = vector.shape_cast %59 : vector<8xf32> to vector<8x1xf32>
      %61 = arith.addf %57, %60 : vector<8x1xf32>
      %c0_25 = arith.constant 0 : index
      %c0_26 = arith.constant 0 : index
      %62 = vector.load %arg8[%c0_25, %c0_26] : memref<8x1xf32, #tpu.memory_space<vmem>>, vector<8x1xf32>
      tpu.vector_store %arg8[%c0_25, %c0_26], %61 {strides = array<i32>} : memref<8x1xf32, #tpu.memory_space<vmem>>, vector<8x1xf32>,
    } else {
    }
    %c1_i32 = arith.constant 1 : i32
    %8 = arith.cmpi eq, %arg0, %c1_i32 : i32
    %9 = arith.extui %8 : i1 to i32
    %c0_i32_4 = arith.constant 0 : i32
    %10 = arith.cmpi ne, %9, %c0_i32_4 : i32
    scf.if %10 {
      %c0 = arith.constant 0 : index
      %c0_5 = arith.constant 0 : index
      %11 = vector.load %arg7[%c0, %c0_5] : memref<8x1xf32, #tpu.memory_space<vmem>>, vector<8x1xf32>
      %cst = arith.constant 5.120000e+02 : f32
      %12 = vector.broadcast %cst : f32 to vector<8x1xf32>
      %13 = arith.divf %11, %12 : vector<8x1xf32>
      %c0_6 = arith.constant 0 : index
      %c0_7 = arith.constant 0 : index
      %14 = vector.load %arg8[%c0_6, %c0_7] : memref<8x1xf32, #tpu.memory_space<vmem>>, vector<8x1xf32>
      %cst_8 = arith.constant 5.120000e+02 : f32
      %15 = vector.broadcast %cst_8 : f32 to vector<8x1xf32>
      %16 = arith.divf %14, %15 : vector<8x1xf32>
      %17 = arith.mulf %13, %13 : vector<8x1xf32>
      %18 = arith.subf %16, %17 : vector<8x1xf32>
      %cst_9 = arith.constant 0.000000e+00 : f32
      %19 = vector.broadcast %cst_9 : f32 to vector<8x1xf32>
      %20 = arith.maximumf %18, %19 : vector<8x1xf32>
      %cst_10 = arith.constant 1.000000e-03 : f32
      %21 = vector.broadcast %cst_10 : f32 to vector<8x1xf32>
      %22 = arith.addf %20, %21 : vector<8x1xf32>
      %23 = math.rsqrt %22 : vector<8x1xf32>
      %c0_11 = arith.constant 0 : index
      %c0_12 = arith.constant 0 : index
      %24 = vector.load %arg4[%c0_11, %c0_12] : memref<8x2xf32, #tpu.memory_space<vmem>>, vector<8x1xf32>
      %25 = arith.mulf %24, %23 : vector<8x1xf32>
      %c0_13 = arith.constant 0 : index
      %c1 = arith.constant 1 : index
      %26 = vector.load %arg4[%c0_13, %c1] : memref<8x2xf32, #tpu.memory_space<vmem>>, vector<8x1xf32>
      %27 = arith.mulf %13, %25 : vector<8x1xf32>
      %28 = arith.subf %26, %27 : vector<8x1xf32>
      %29 = arith.index_cast %arg1 : i32 to index
      %c0_14 = arith.constant 0 : index
      %c0_15 = arith.constant 0 : index
      %30 = vector.load %arg6[%29, %c0_14, %c0_15] : memref<2x8x288xf32, #tpu.memory_space<vmem>>, vector<1x8x288xf32>
      %31 = vector.shape_cast %30 : vector<1x8x288xf32> to vector<8x288xf32>
      %32 = vector.broadcast %25 : vector<8x1xf32> to vector<8x288xf32>
      %33 = arith.mulf %31, %32 : vector<8x288xf32>
      %34 = vector.broadcast %28 : vector<8x1xf32> to vector<8x288xf32>
      %35 = arith.addf %33, %34 : vector<8x288xf32>
      %cst_16 = arith.constant 0.000000e+00 : f32
      %36 = vector.broadcast %cst_16 : f32 to vector<8x288xf32>
      %37 = arith.maximumf %35, %36 : vector<8x288xf32>
      %c0_17 = arith.constant 0 : index
      %c0_18 = arith.constant 0 : index
      %c0_19 = arith.constant 0 : index
      %38 = vector.load %arg5[%c0_17, %c0_18, %c0_19] : memref<1x8x288xf32, #tpu.memory_space<vmem>>, vector<1x8x288xf32>
      %39 = vector.shape_cast %38 : vector<1x8x288xf32> to vector<8x288xf32>
      %40 = vector.shape_cast %37 : vector<8x288xf32> to vector<1x8x288xf32>
      tpu.vector_store %arg5[%c0_17, %c0_18, %c0_19], %40 {strides = array<i32>} : memref<1x8x288xf32, #tpu.memory_space<vmem>>, vector<1x8x288xf32>,
    } else {
    }
    return
  }
  func.func @transform_0(%arg0: i32, %arg1: i32) -> (i32, i32, i32) {
    %c0_i32 = arith.constant 0 : i32
    %c0_i32_0 = arith.constant 0 : i32
    %c0_i32_1 = arith.constant 0 : i32
    return %arg1, %c0_i32, %c0_i32_0 : i32, i32, i32
  }
  func.func @transform_1(%arg0: i32, %arg1: i32) -> (i32, i32) {
    %c0_i32 = arith.constant 0 : i32
    %c0_i32_0 = arith.constant 0 : i32
    %c0_i32_1 = arith.constant 0 : i32
    return %c0_i32, %c0_i32_0 : i32, i32
  }
  func.func @transform_2(%arg0: i32, %arg1: i32) -> (i32, i32) {
    %c0_i32 = arith.constant 0 : i32
    %c0_i32_0 = arith.constant 0 : i32
    %c0_i32_1 = arith.constant 0 : i32
    return %c0_i32, %c0_i32_0 : i32, i32
  }
  func.func @transform_3(%arg0: i32, %arg1: i32) -> (i32, i32, i32) {
    %0 = arith.muli %arg1, %arg0 : i32
    %c0_i32 = arith.constant 0 : i32
    %c0_i32_0 = arith.constant 0 : i32
    %c0_i32_1 = arith.constant 0 : i32
    return %0, %c0_i32, %c0_i32_0 : i32, i32, i32
  }
}

</mosaic_0001>

<bundles_post_ra>
// kernel: conv_block_forward.1
= control target key start
LH: loop header
LB: loop body
LE: loop exit
PB: predicated region body
PF: predicated region fallthrough
CT: control target
= control target key end

     0   :  { %s916_s12 = smov 0   ;;  %s918_s13 = smov 0   ;;  %s1047_s0 = inlined_call_operand.vmem [shape: f32[2,4,342], index: 0, kind: input, shape index: {}]   ;;  %s1048_s1 = inlined_call_operand.vmem [shape: f32[8,36], index: 1, kind: input, shape index: {}]   ;;  %s1049_s2 = inlined_call_operand.vmem [shape: f32[8,2], index: 2, kind: input, shape index: {}]   ;;  %s1050_s3 = inlined_call_operand.vmem [shape: f32[2,8,288], index: 3, kind: output, shape index: {}]  }
   0x1   :  { %s920_s14 = smov 0   ;;  %s922_s15 = smov 0  }
   0x2   :  { %s924_s16 = smov 0  }
   0x3 LB: > { %s22_s17 = sadd.s32 1, %s871_s14  ;;  %s25_s18 = sadd.s32 1, %s875_s15  ;;  %s879_s16 = sphi %s924_s16, %s13_s16   ;;  %s875_s15 = sphi %s922_s15, %s1054_s15   ;;  %s871_s14 = sphi %s920_s14, %s1053_s14   ;;  %s867_s13 = sphi %s918_s13, %s1052_s13   ;;  %s863_s12 = sphi %s916_s12, %s1051_s12  }
   0x4   : > { %p23_p0 = scmp.ge.s32.totalorder %s22_s17, 2  ;;  %p686_p1 = scmp.ge.s32.totalorder %s879_s16, 1 }
   0x5   : > { %p151_p2 = scmp.lt.s32.totalorder %s879_s16, 5 }
   0x6   : > { %s1056_s17 = smov (%p23_p0, %s22_s17), 0  ;;  %s1058_s18 = smov (!%p23_p0, %s25_s18), %s875_s15 }
   0x7   : > { %p152_p3 = pnand %p686_p1, %p151_p2  ;;  %p27_p4 = scmp.ge.s32.totalorder %s1058_s18, 2 }
   0x8   : > { %p176_p5 = scmp.lt.s32.totalorder (!%p152_p3), %s863_s12, 1  ;;  %s181_s19 = smul.u32 (!%p152_p3), %s863_s12, %s867_s13 }
   0x9   : > { %s1060_s18 = smov (%p27_p4, %s1058_s18), 0  ;;  %155 = sbr.rel (%p152_p3) target bundleno = 825 (0x339), region = 32 }
   0xa   : > { %p188_p6 = scmp.eq.s32.totalorder (!%p152_p3), %s867_s13, 0  ;;  %p189_p7 = scmp.eq.s32.totalorder (!%p152_p3), %s863_s12, 0 }
   0xb   : > { %p182_p8 = scmp.lt.s32.totalorder (!%p152_p3), %s181_s19, 1 }
   0xc   : > { %p190_p9 = pnand (!%p152_p3), %p189_p7, %p188_p6 }
  0x10   : > { %s177_s20 = scalar_select %p176_p5, %s863_s12, 1 }
  0x11   : > { %s1062_s19 = smov (!%p182_p8, %s181_s19), 1  ;;  %193 = sbr.rel (%p190_p9) target bundleno = 24 (0x18), region = 36 }
  0x12   : > { %s735_s21 = smul.u32 12, %s177_s20  ;;  %vm194_vm0 = vcmask (!%p190_p9), 7168   ;;  %v881_v0 = vmov (!%p190_p9), 0.0  }
  0x13   : > { %s736_s25 = smul.u32 24, %s1062_s19  ;;  %195 = vst.msk [vmem:[#allocation3] sm:$0xff] (!%p190_p9), %vm194_vm0, %v881_v0  ;;  %196 = vst.msk [vmem:[#allocation4] sm:$0xff] (!%p190_p9), %vm194_vm0, %v881_v0 }
  0x14   : > { %s180_s24 = scalar_lea.vmem %s1047_s0, %s735_s21 }
  0x15   : > { %s962_s28 = scalar_lea.vmem %s1050_s3, %s736_s25 }
  0x18 PF: > { %p689_p10 = scmp.ne.s32.totalorder %s867_s13, 0 }
  0x19   : > { %v965_v1 = vld [vmem:[%s180_s24] sm:$0xff] (!%p689_p10)  ;;  %v201_v2 = vld [vmem:[%s180_s24 + $0x8] sm:$0xf] (!%p689_p10)  ;;  %v882_v6 = vmov (!%p689_p10), 0.0|0.0   ;;  %s883_s29 = smov (!%p689_p10), 110   ;;  %s884_s30 = smov (!%p689_p10), 127  }
  0x1a   : > { %199 = sbr.rel (%p689_p10) target bundleno = 544 (0x220), region = 40  ;;  %v207_v3 = vcombine.low (!%p689_p10), %v201_v2, %v201_v2  ;;  %v204_v4 = vcombine.high (!%p689_p10), %v965_v1, %v965_v1  ;;  %729 = vmatprep.subr.bf16.mxu1 (!%p689_p10), %v882_v6  ;;  %v206_v7 = vcombine.low (!%p689_p10), %v965_v1, %v965_v1  ;;  %s885_s4 = smov (!%p689_p10), 126   ;;  %v890_v9 = vmov (!%p689_p10), 0.0  }
  0x1b   : > { %s886_s5 = smov (!%p689_p10), 108   ;;  %s887_s6 = smov (!%p689_p10), 109   ;;  %389 = vmatprep.mubr.f32.mxu0 (!%p689_p10), %v890_v9  ;;  %vm891_vm1 = vmmov (!%p689_p10), 0   ;;  %vm214_vm2 = vcmask (!%p689_p10), 1039360   ;;  %vm301_vm3 = vcmask (!%p689_p10), 1043456   ;;  %vm238_vm4 = vcmask (!%p689_p10), 900096  }
  0x1c   : > { %v808_v5 = vpack.i.bf16 (!%p689_p10), %v207_v3, %v965_v1  ;;  %v803_v8 = vpack.i.bf16 (!%p689_p10), %v201_v2, %v204_v4  ;;  %s888_s7 = smov (!%p689_p10), 91   ;;  %s889_s8 = smov (!%p689_p10), 92   ;;  %718 = vmatprep.mubr.msk.f32.mxu1 (!%p689_p10), %vm891_vm1, %v890_v9  ;;  %vm226_vm5 = vcmask (!%p689_p10), 1031168   ;;  %vm262_vm6 = vcmask (!%p689_p10), 883712  }
  0x1d   : > { %s892_s9 = smov (!%p689_p10), 90   ;;  %vm250_vm7 = vcmask (!%p689_p10), 891904   ;;  %vm286_vm8 = vcmask (!%p689_p10), 744448   ;;  %vm274_vm9 = vcmask (!%p689_p10), 752640   ;;  %vm298_vm10 = vcmask (!%p689_p10), 736256   ;;  %s700_s19 = smul.u32 (!%p689_p10), 24, %s863_s12 }
  0x1e   : > { %809 = vrot.lane.b32.xlu1 (!%p689_p10), %v808_v5, %s883_s29  ;;  %799 = vrot.lane.b32.xlu0 (!%p689_p10), %v808_v5, %s884_s30  ;;  %vm315_vm11 = vcmask (!%p689_p10), 293888  }
  0x1f   : > { %s468_s20 = scalar_lea.vmem (!%p689_p10), [#allocation2], %s700_s19 }
  0x22   : > { %208 = vrot.lane.b32.xlu1 %v206_v7, %s884_s30  ;;  %804 = vrot.lane.b32.xlu0 %v803_v8, %s885_s4 }
  0x26   : > { %232 = vrot.lane.b32.xlu1 %v206_v7, %s883_s29  ;;  %220 = vrot.lane.b32.xlu0 %v965_v1, %s885_s4 }
  0x2a   : > { %819 = vrot.lane.b32.xlu1 %v808_v5, %s886_s5  ;;  %814 = vrot.lane.b32.xlu0 %v803_v8, %s887_s6 }
  0x2e   : > { %829 = vrot.lane.b32.xlu1 %v808_v5, %s888_s7  ;;  %824 = vrot.lane.b32.xlu0 %v803_v8, %s889_s8 }
  0x32   : > { %256 = vrot.lane.b32.xlu1 %v206_v7, %s886_s5  ;;  %244 = vrot.lane.b32.xlu0 %v965_v1, %s887_s6 }
  0x36   : > { %280 = vrot.lane.b32.xlu1 %v206_v7, %s888_s7  ;;  %268 = vrot.lane.b32.xlu0 %v965_v1, %s889_s8 }
  0x3a   : > { %296 = vrot.lane.b32.xlu1 %v201_v2, %s892_s9  ;;  %294 = vrot.lane.b32.xlu0 %v204_v4, %s892_s9 }
  0x3e   : > { %292 = vrot.lane.b32.xlu0 %v965_v1, %s892_s9 }
  0x90   : > { %v810_v10 = vpop.permute.xlu1 %809  ;;  %v800_v11 = vpop.permute.xlu0 %799 }
  0x91   : > { %v802_v12 = vunpack.i.h.bf16 %v800_v11  ;;  %v801_v13 = vunpack.i.l.bf16 %v800_v11  ;;  %v812_v14 = vunpack.i.h.bf16 %v810_v10  ;;  %v811_v15 = vunpack.i.l.bf16 %v810_v10 }
  0x93   : > { %v216_v20 = vsel %vm214_vm2, %v801_v13, %v802_v12  ;;  %v304_v21 = vsel %vm301_vm3, %v201_v2, %v802_v12  ;;  %v240_v25 = vsel %vm238_vm4, %v811_v15, %v812_v14  ;;  %v473_v12 = vlaneseq }
  0x94   : > { %v209_v16 = vpop.permute.xlu1 %208  ;;  %v805_v17 = vpop.permute.xlu0 %804  ;;  %v303_v29 = vsel %vm301_vm3, %v204_v4, %v216_v20 }
  0x95   : > { %v807_v18 = vunpack.i.h.bf16 %v805_v17  ;;  %v806_v19 = vunpack.i.l.bf16 %v805_v17  ;;  %v215_v22 = vsel %vm214_vm2, %v209_v16, %v801_v13  ;;  %v474_v13 = vand.u32 127, %v473_v12 }
  0x96   : > { %v302_v34 = vsel %vm301_vm3, %v965_v1, %v215_v22 }
  0x97   : > { %v307_v23 = vsel %vm301_vm3, %v807_v18, %v812_v14  ;;  %v228_v24 = vsel %vm226_vm5, %v806_v19, %v807_v18  ;;  %v476_v14 = vadd.s32 256, %v474_v13  ;;  %v475_v17 = vadd.s32 128, %v474_v13 }
  0x98   : > { %v233_v26 = vpop.permute.xlu1 %232  ;;  %v221_v27 = vpop.permute.xlu0 %220  ;;  %v730_v28 = vpack.c.bf16 %v307_v23, %v304_v21  ;;  %v306_v30 = vsel %vm301_vm3, %v228_v24, %v240_v25 }
  0x99   : > { %v239_v31 = vsel %vm238_vm4, %v233_v26, %v811_v15  ;;  %v227_v32 = vsel %vm226_vm5, %v221_v27, %v806_v19  ;;  %v721_v33 = vpack.c.bf16 %v306_v30, %v303_v29  ;;  %vm471_vm5 = vcmask 261120  }
  0x9a   : > { %731 = vmatpush3.bf16.msra.mxu1 %v730_v28  ;;  %v305_v35 = vsel %vm301_vm3, %v227_v32, %v239_v31  ;;  %v1008_v15 = vmul.u32.u64.low 3817748708, %v476_v14  ;;  %v1009_v16 = vmul.u32.u64.high 3817748708, %v476_v14, %v1008_v15 }
  0x9b   : > { %722 = vmatprep.subr.bf16.mxu0 %v721_v33  ;;  %v723_v36 = vpack.c.bf16 %v305_v35, %v302_v34  ;;  %732 = vmatprep.subr.bf16.mxu1 %v882_v6  ;;  %v314_v6 = vld [vmem:[%s1048_s1] sm:$0xff]  ;;  %v1011_v18 = vmul.u32.u64.low 3817748708, %v474_v13  ;;  %v1012_v19 = vmul.u32.u64.high 3817748708, %v474_v13, %v1011_v18 }
  0x9c   : > { %v820_v37 = vpop.permute.xlu1 %819  ;;  %v815_v38 = vpop.permute.xlu0 %814  ;;  %v1014_v20 = vmul.u32.u64.low 3817748708, %v475_v17  ;;  %v1015_v21 = vmul.u32.u64.high 3817748708, %v475_v17, %v1014_v20  ;;  %v505_v22 = vshrl.u32 %v1009_v16, 4 }
  0x9d   : > { %v822_v39 = vunpack.i.h.bf16 %v820_v37  ;;  %v821_v40 = vunpack.i.l.bf16 %v820_v37  ;;  %v817_v41 = vunpack.i.h.bf16 %v815_v38  ;;  %v816_v42 = vunpack.i.l.bf16 %v815_v38  ;;  %724 = vmatpush1.bf16.msra.mxu0 %v723_v36 }
  0x9e   : > { %v483_v23 = vshrl.u32 %v1012_v19, 4  ;;  %v506_v24 = vmul.u32 18, %v505_v22  ;;  %v494_v25 = vshrl.u32 %v1015_v21, 4 }
  0x9f   : > { %v264_v45 = vsel %vm262_vm6, %v821_v40, %v822_v39  ;;  %v252_v46 = vsel %vm250_vm7, %v816_v42, %v817_v41  ;;  %v310_v53 = vsel %vm301_vm3, %v817_v41, %v822_v39 }
  0xa0   : > { %v830_v43 = vpop.permute.xlu1 %829  ;;  %v825_v44 = vpop.permute.xlu0 %824  ;;  %v309_v58 = vsel %vm301_vm3, %v252_v46, %v264_v45  ;;  %v484_v26 = vmul.u32 18, %v483_v23  ;;  %v507_v27 = vsub.s32 %v476_v14, %v506_v24  ;;  %v495_v28 = vmul.u32 18, %v494_v25 }
  0xa1   : > { %v832_v47 = vunpack.i.h.bf16 %v830_v43  ;;  %v831_v48 = vunpack.i.l.bf16 %v830_v43  ;;  %v827_v49 = vunpack.i.h.bf16 %v825_v44  ;;  %v826_v50 = vunpack.i.l.bf16 %v825_v44 }
  0xa2   : > { %v485_v29 = vsub.s32 %v474_v13, %v484_v26  ;;  %vm512_vm12 = vcmp.ne.s32.totalorder %v507_v27, 0  ;;  %vm515_vm13 = vcmp.lt.s32.totalorder %v507_v27, 0  ;;  %v496_v30 = vsub.s32 %v475_v17, %v495_v28 }
  0xa3   : > { %v288_v51 = vsel %vm286_vm8, %v831_v48, %v832_v47  ;;  %v276_v52 = vsel %vm274_vm9, %v826_v50, %v827_v49  ;;  %v313_v54 = vsel %vm301_vm3, %v827_v49, %v832_v47  ;;  %v521_v31 = vadd.s32 18, %v507_v27  ;;  %vm518_vm14 = vmand %vm515_vm13, %vm512_vm12 }
  0xa4   : > { %v257_v55 = vpop.permute.xlu1 %256  ;;  %v245_v56 = vpop.permute.xlu0 %244  ;;  %v733_v57 = vpack.c.bf16 %v313_v54, %v310_v53  ;;  %v312_v59 = vsel %vm301_vm3, %v276_v52, %v288_v51  ;;  %vm510_vm15 = vcmp.ne.s32.totalorder %v485_v29, 0  ;;  %vm513_vm0 = vcmp.lt.s32.totalorder %v485_v29, 0  ;;  %v537_v53 = vld [vmem:[#allocation3] sm:$0xff] }
  0xa5   : > { %v725_v60 = vpack.c.bf16 %v312_v59, %v309_v58  ;;  %v263_v61 = vsel %vm262_vm6, %v257_v55, %v821_v40  ;;  %v251_v62 = vsel %vm250_vm7, %v245_v56, %v816_v42  ;;  %vm511_vm1 = vcmp.ne.s32.totalorder %v496_v30, 0  ;;  %v546_v55 = vld [vmem:[#allocation4] sm:$0xff] }
  0xa6   : > { %734 = vmatpush3.bf16.msra.mxu1 %v733_v57  ;;  %v308_v3 = vsel %vm301_vm3, %v251_v62, %v263_v61  ;;  %vm514_vm2 = vcmp.lt.s32.totalorder %v496_v30, 0  ;;  %v519_v32 = vadd.s32 18, %v485_v29  ;;  %v524_v33 = vsel %vm518_vm14, %v521_v31, %v507_v27 }
  0xa7   : > { %726 = vmatprep.subr.bf16.mxu0 %v725_v60  ;;  %716 = vmatprep.subr.mxu1 %v890_v9  ;;  %v520_v34 = vadd.s32 18, %v496_v30  ;;  %vm517_vm4 = vmand %vm514_vm2, %vm511_vm1  ;;  %vm527_vm6 = vcmp.lt.s32.totalorder %v524_v33, 16 }
  0xa8   : > { %v281_v63 = vpop.permute.xlu1 %280  ;;  %v269_v0 = vpop.permute.xlu0 %268 }
  0xa9   : > { %v287_v1 = vsel %vm286_vm8, %v281_v63, %v831_v48  ;;  %v275_v2 = vsel %vm274_vm9, %v269_v0, %v826_v50  ;;  %v523_v37 = vsel %vm517_vm4, %v520_v34, %v496_v30  ;;  %vm544_vm9 = vcmask 7168  }
  0xaa   : > { %v311_v4 = vsel %vm301_vm3, %v275_v2, %v287_v1  ;;  %vm526_vm8 = vcmp.lt.s32.totalorder %v523_v37, 16 }
  0xab   : > { %v727_v5 = vpack.c.bf16 %v311_v4, %v308_v3 }
  0xac   : > { %v297_v7 = vpop.permute.xlu1 %296  ;;  %v295_v8 = vpop.permute.xlu0 %294 }
  0xad   : > { %v300_v9 = vsel %vm298_vm10, %v295_v8, %v297_v7  ;;  %728 = vmatpush1.bf16.msra.mxu0 %v727_v5  ;;  %717 = vmatpush3.msk.msra.mxu1 %vm301_vm3, %v297_v7 }
  0xae   : > { %690 = vmatprep.subr.msk.mxu0 %vm301_vm3, %v300_v9  ;;  %719 = vmatmul.mubr.msk.f32.vlgmr.msra.gmra.mrb[0].mxu1 %vm315_vm11, %v314_v6 }
  0xb0   : > { %v293_v10 = vpop.permute.xlu0 %292 }
  0xb1   : > { %v299_v11 = vsel %vm298_vm10, %v293_v10, %v295_v8 }
  0xb2   : > { %691 = vmatpush1.msk.msra.mxu0 %vm301_vm3, %v299_v11  ;;  %vm516_vm3 = vmand %vm513_vm0, %vm510_vm15 }
  0xb3   : > { %692 = vmatmul.mubr.msk.f32.vlgmr.msra.gmra.mrb[0].mxu0 %vm315_vm11, %v314_v6  ;;  %v522_v35 = vsel %vm516_vm3, %v519_v32, %v485_v29 }
  0xb4   : > { %vm525_vm7 = vcmp.lt.s32.totalorder %v522_v35, 16 }
 0x181   : > { %v462_v36 = vpop.f32.mrb[0].mxu1 }
 0x182   : > { %472 = vst.msk [vmem:[%s468_s20 + $0x10] sm:$0xff] %vm471_vm5, %v462_v36  ;;  %v720_v38 = vpop.f32.mrb[1].mxu1  ;;  %v536_v39 = vsel %vm527_vm6, %v462_v36, 0.0 }
 0x183   : > { %v549_v41 = vmul.f32 %v536_v39, %v536_v39  ;;  %v539_v46 = vsel %vm471_vm5, %v536_v39, 0.0 }
 0x185   : > { %v551_v49 = vsel %vm471_vm5, %v549_v41, 0.0 }
 0x186   : > { %v391_v40 = vpop.f32.mrb[0].mxu0 }
 0x187   : > { %469 = vst [vmem:[%s468_s20] sm:$0xff] %v391_v40  ;;  %v534_v42 = vsel %vm525_vm7, %v391_v40, 0.0  ;;  %v393_v43 = vpop.f32.mrb[1].mxu0 }
 0x188   : > { %v547_v44 = vmul.f32 %v534_v42, %v534_v42  ;;  %470 = vst [vmem:[%s468_s20 + $0x8] sm:$0xff] %v393_v43  ;;  %v535_v45 = vsel %vm526_vm8, %v393_v43, 0.0 }
 0x189   : > { %v538_v47 = vadd.f32 %v535_v45, %v534_v42  ;;  %v548_v48 = vmul.f32 %v535_v45, %v535_v45 }
 0x18b   : > { %v540_v50 = vadd.f32 %v539_v46, %v538_v47  ;;  %v550_v51 = vadd.f32 %v548_v48, %v547_v44 }
 0x18d   : > { %541 = vadd.xlane.f32.xlu1 %v540_v50  ;;  %v552_v52 = vadd.f32 %v551_v49, %v550_v51 }
 0x18f   : > { %553 = vadd.xlane.f32.xlu0 %v552_v52 }
 0x21a   : > { %v542_v54 = vpop.xlane.xlu1 %541 }
 0x21b   : > { %v543_v56 = vadd.f32 %v542_v54, %v537_v53 }
 0x21c   : > { %v554_v57 = vpop.xlane.xlu0 %553 }
 0x21d   : > { %545 = vst.msk [vmem:[#allocation3] sm:$0xff] %vm544_vm9, %v543_v56  ;;  %v555_v58 = vadd.f32 %v554_v57, %v546_v55 }
 0x21f   : > { %556 = vst.msk [vmem:[#allocation4] sm:$0xff] %vm544_vm9, %v555_v58 }
 0x220 PF: > { %p696_p11 = scmp.ne.s32.totalorder %s867_s13, 1 }
 0x221   : > { %v893_v63 = vmov (!%p696_p11), 0   ;;  %v894_v4 = vmov (!%p696_p11), 1   ;;  %v571_v5 = vld [vmem:[%s1049_s2] sm:$0xff] (!%p696_p11)  ;;  %s895_s13 = smov (!%p696_p11), 1   ;;  %s701_s23 = smul.u32 (!%p696_p11), 24, %s863_s12  ;;  %vm606_vm10 = vcmask (!%p696_p11), 261120  }
 0x222   : > { %560 = sbr.rel (%p696_p11) target bundleno = 825 (0x339), region = 44  ;;  %836 = vset.pattern.permute.xlu0 (!%p696_p11), %v893_v63  ;;  %837 = vset.pattern.permute.xlu1 (!%p696_p11), %v894_v4 }
 0x223   : > { %s581_s24 = scalar_lea.vmem (!%p696_p11), [#allocation2], %s701_s23 }
 0x224   : > { %v561_v59 = vld [vmem:[#allocation3] sm:$0xff] (!%p696_p11)  ;;  %v582_v11 = vld [vmem:[%s581_s24] sm:$0xff] (!%p696_p11)  ;;  %v583_v12 = vld [vmem:[%s581_s24 + $0x8] sm:$0xff] (!%p696_p11) }
 0x225   : > { %v563_v61 = vmul.f32 (!%p696_p11), 0.001953125, %v561_v59  ;;  %v584_v13 = vld [vmem:[%s581_s24 + $0x10] sm:$0xff] (!%p696_p11) }
 0x226   : > { %v564_v60 = vld [vmem:[#allocation4] sm:$0xff] (!%p696_p11) }
 0x227   : > { %v565_v62 = vmul.f32 (!%p696_p11), 0.001953125, %v564_v60  ;;  %v566_v0 = vmul.f32 (!%p696_p11), %v563_v61, %v563_v61 }
 0x229   : > { %v567_v1 = vsub.f32 %v565_v62, %v566_v0 }
 0x22b   : > { %v568_v2 = vmax.f32 %v567_v1, 0.0 }
 0x22d   : > { %v569_v3 = vadd.f32 0.001, %v568_v2 }
 0x22f   : > { %839 = vrsqrt.f32 %v569_v3 }
 0x239   : > { %v840_v6 = vpop.eup %839 }
 0x23a   : > { %v572_v7 = vmul.f32 %v840_v6, %v571_v5 }
 0x23c   : > { %v573_v8 = vmul.f32 %v572_v7, %v563_v61 }
 0x23e   : > { %575 = vrot.lane.b32.xlu0 %v573_v8, %s895_s13 }
 0x242   : > { %587 = vperm.xlu0 %836, %v572_v7  }
 0x246   : > { %838 = vset.pattern.permute.xlu0 %v894_v4 }
 0x2b0   : > { %v576_v9 = vpop.permute.xlu0 %575 }
 0x2b1   : > { %v578_v10 = vsub.f32 %v571_v5, %v576_v9 }
 0x2b3   : > { %595 = vperm.xlu1 %837, %v578_v10  }
 0x2c1   : > { %v588_v14 = vpop.permute.xlu0 %587 }
 0x2c2   : > { %v590_v15 = vmul.f32 %v588_v14, %v582_v11  ;;  %v591_v16 = vmul.f32 %v588_v14, %v583_v12  ;;  %v592_v17 = vmul.f32 %v588_v14, %v584_v13 }
 0x332   : > { %v596_v18 = vpop.permute.xlu1 %595 }
 0x333   : > { %v598_v19 = vadd.f32 %v596_v18, %v590_v15  ;;  %v599_v20 = vadd.f32 %v596_v18, %v591_v16  ;;  %v600_v21 = vadd.f32 %v596_v18, %v592_v17 }
 0x335   : > { %v601_v22 = vmax.f32 %v598_v19, 0.0  ;;  %v602_v23 = vmax.f32 %v599_v20, 0.0  ;;  %v603_v24 = vmax.f32 %v600_v21, 0.0 }
 0x337   : > { %604 = vst [vmem:[%s962_s28] sm:$0xff] %v601_v22  ;;  %605 = vst [vmem:[%s962_s28 + $0x8] sm:$0xff] %v602_v23 }
 0x338   : > { %607 = vst.msk [vmem:[%s962_s28 + $0x10] sm:$0xff] %vm606_vm10, %v603_v24 }
 0x339 PF: > { %s13_s16 = sadd.s32 1, %s879_s16   ;;  %s1051_s12 = smov %s871_s14 }
 0x33a   : > { %p10_p12 = scmp.ge.s32.totalorder %s13_s16, 6   ;;  %s1052_s13 = smov %s875_s15 }
 0x33b   : > { %s1053_s14 = smov %s1056_s17  ;;  %s1054_s15 = smov %s1060_s18 }
 0x33c   :  { %12 = sbr.rel (!%p10_p12) target bundleno = 3 (0x3), region = 76 }

</bundles_post_ra>
